<compile_context>
chip_gen: v7x
topology: tpu7x:2x2x1
jax: 0.10.0
libtpu: 0.0.40
codegen_flags: <defaults>
</compile_context>

<pallas_src>
import functools

import jax
import jax.numpy as jnp
from jax.experimental import pallas as pl
from jax.experimental.pallas import tpu as pltpu


# ----------------------------------------------------------------------------
# Pallas kernel:
#   h   = LeakyReLU( sum_h v_h @ W1^T[h*64:(h+1)*64, :] + b1 )      (f32 epilogue)
#   out = h @ W2^T_pad + b2_pad                                      (f32, 8 lanes)
# ----------------------------------------------------------------------------
def _protac_head_kernel(v0_ref, v1_ref, v2_ref, v3_ref, v4_ref,
                        w1t_ref, b1_ref, w2t_ref, b2_ref, o_ref):
    # v*_ref : (TB, 64) bf16          w1t_ref: (320, 64) bf16   b1_ref: (1, 64) f32
    # w2t_ref: (64, 8) f32 (cols 2..7 zero)                     b2_ref: (1, 8) f32
    # o_ref  : (TB, 8) f32 (only cols 0..1 meaningful)
    #
    # fc1: five clean K=64 MXU pushes (concat fused away), f32 accumulation.
    h = jnp.dot(v0_ref[...], w1t_ref[pl.ds(0, 64), :],
                preferred_element_type=jnp.float32)
    for idx, v_ref in enumerate((v1_ref, v2_ref, v3_ref, v4_ref), start=1):
        h = h + jnp.dot(v_ref[...], w1t_ref[pl.ds(idx * 64, 64), :],
                        preferred_element_type=jnp.float32)
    h = h + b1_ref[...]                      # bias in f32
    h = jnp.where(h > 0, h, 0.01 * h)        # LeakyReLU(negative_slope=0.01), f32 VPU
    # fc2 kept in f32 (tiny) to avoid a second rounding on the logits.
    out = jnp.dot(h, w2t_ref[...], preferred_element_type=jnp.float32)
    o_ref[...] = out + b2_ref[...]           # narrow (TB, 8) store


def _round_up(x, m):
    return ((x + m - 1) // m) * m


@functools.partial(jax.jit, static_argnames=("block_rows",))
def protac_head(v0, v1, v2, v3, v4, w1t, b1, w2t, b2, *, block_rows=1024):
    B = v0.shape[0]
    # bf16 activation tiles pack 16 rows per vreg -> tile rows must be a mult of 16.
    block_rows = max(16, (int(block_rows) // 16) * 16)

    b16 = _round_up(B, 16)
    tb = min(block_rows, b16)
    # Keep the grid >= 2 steps when the batch allows so v7x can shard the
    # "parallel" axis across both TensorCores (no effect on v5e/v6e correctness).
    if b16 >= 32 and b16 // tb < 2:
        tb = _round_up((b16 + 1) // 2, 16)
    bp = _round_up(B, tb)
    grid = (bp // tb,)

    def prep(v):
        v = v.astype(jnp.bfloat16)           # no-op if sub-model already emits bf16
        if bp != B:                          # minimal batch pad (bounded waste)
            v = jnp.pad(v, ((0, bp - B), (0, 0)))
        return v

    vs = [prep(v) for v in (v0, v1, v2, v3, v4)]

    w1t_bf = w1t.astype(jnp.bfloat16)
    # fc2 padded only to 8 lanes (f32), not 128: last block dim == full array dim.
    w2t_p = jnp.zeros((64, 8), jnp.float32).at[:, :2].set(w2t.astype(jnp.float32))
    b2_p = jnp.zeros((1, 8), jnp.float32).at[:, :2].set(b2.astype(jnp.float32))

    act_spec = pl.BlockSpec((tb, 64), lambda i: (i, 0))
    out = pl.pallas_call(
        _protac_head_kernel,
        out_shape=jax.ShapeDtypeStruct((bp, 8), jnp.float32),
        grid=grid,
        in_specs=[act_spec, act_spec, act_spec, act_spec, act_spec,   # v0..v4 tiled
                  pl.BlockSpec((320, 64), lambda i: (0, 0)),          # W1^T resident
                  pl.BlockSpec((1, 64),   lambda i: (0, 0)),          # b1 resident
                  pl.BlockSpec((64, 8),   lambda i: (0, 0)),          # W2^T (8-lane pad)
                  pl.BlockSpec((1, 8),    lambda i: (0, 0))],         # b2 (8-lane pad)
        out_specs=pl.BlockSpec((tb, 8), lambda i: (i, 0)),
        compiler_params=pltpu.CompilerParams(
            dimension_semantics=("parallel",)),
    )(*vs, w1t_bf, b1.astype(jnp.float32), w2t_p, b2_p)

    return out[:B, :2]


# ----------------------------------------------------------------------------
# Deterministic parameter init + stand-in sub-models (plain JAX glue)
# ----------------------------------------------------------------------------
def _init_params(key):
    ks = jax.random.split(key, 10)
    scale = 0.05
    return {
        # ProtacModel head (PyTorch nn.Linear stores weight as (out, in); we keep W^T).
        "w1t": scale * jax.random.normal(ks[0], (320, 64), jnp.float32),   # fc1.weight^T
        "b1":  scale * jax.random.normal(ks[1], (1, 64), jnp.float32),     # fc1.bias
        "w2t": scale * jax.random.normal(ks[2], (64, 2), jnp.float32),     # fc2.weight^T
        "b2":  scale * jax.random.normal(ks[3], (1, 2), jnp.float32),      # fc2.bias
        # Stand-in sub-model projections (node/token feature dim 32 -> 64).
        "p_ll": scale * jax.random.normal(ks[4], (32, 64), jnp.float32),
        "p_lp": scale * jax.random.normal(ks[5], (32, 64), jnp.float32),
        "p_tl": scale * jax.random.normal(ks[6], (32, 64), jnp.float32),
        "p_tp": scale * jax.random.normal(ks[7], (32, 64), jnp.float32),
        "emb":  scale * jax.random.normal(ks[8], (16, 32), jnp.float32),   # smiles vocab=16
        "p_sm": scale * jax.random.normal(ks[9], (32, 64), jnp.float32),
    }


def _graph_standin(x, proj):
    # x: (B, N, 32) node features -> mean pool -> (B, 64); emit bf16 so the cast
    # fuses into the upstream matmul instead of a separate HBM pass.
    return (jnp.mean(x, axis=1) @ proj).astype(jnp.bfloat16)


def _smiles_standin(tokens, lengths, emb, proj):
    # tokens: (B, S) int32, lengths: (B,) int32 -> masked mean of embeddings -> (B, 64)
    e = emb[tokens]                                        # (B, S, 32)
    mask = (jnp.arange(tokens.shape[1])[None, :] < lengths[:, None]).astype(jnp.float32)
    pooled = (e * mask[:, :, None]).sum(axis=1) / jnp.maximum(
        mask.sum(axis=1, keepdims=True), 1.0)
    return (pooled @ proj).astype(jnp.bfloat16)


def protac_model_forward(params, ligase_ligand, ligase_pocket, target_ligand,
                         target_pocket, smiles, smiles_length):
    v0 = _graph_standin(ligase_ligand, params["p_ll"])
    v1 = _graph_standin(ligase_pocket, params["p_lp"])
    v2 = _graph_standin(target_ligand, params["p_tl"])
    v3 = _graph_standin(target_pocket, params["p_tp"])
    v4 = _smiles_standin(smiles, smiles_length, params["emb"], params["p_sm"])
    return protac_head(v0, v1, v2, v3, v4,
                       params["w1t"], params["b1"], params["w2t"], params["b2"])


if __name__ == "__main__":
    key = jax.random.PRNGKey(0)
    k_in, k_par = jax.random.split(key)
    kis = jax.random.split(k_in, 6)

    B, N, S, F = 2, 8, 8, 32
    ligase_ligand = jax.random.normal(kis[0], (B, N, F), jnp.float32)
    ligase_pocket = jax.random.normal(kis[1], (B, N, F), jnp.float32)
    target_ligand = jax.random.normal(kis[2], (B, N, F), jnp.float32)
    target_pocket = jax.random.normal(kis[3], (B, N, F), jnp.float32)
    smiles = jax.random.randint(kis[4], (B, S), 0, 16, jnp.int32)
    smiles_length = jnp.array([S, S // 2], jnp.int32)

    params = _init_params(k_par)

    out = protac_model_forward(params, ligase_ligand, ligase_pocket,
                               target_ligand, target_pocket, smiles, smiles_length)
    out = jax.block_until_ready(out)
    assert out.shape == (B, 2), out.shape

    # Pure-JAX f32 reference for the Pallas head (kernel uses bf16 fc1 operands,
    # so compare with a bf16-appropriate tolerance).
    v0 = _graph_standin(ligase_ligand, params["p_ll"]).astype(jnp.float32)
    v1 = _graph_standin(ligase_pocket, params["p_lp"]).astype(jnp.float32)
    v2 = _graph_standin(target_ligand, params["p_tl"]).astype(jnp.float32)
    v3 = _graph_standin(target_pocket, params["p_tp"]).astype(jnp.float32)
    v4 = _smiles_standin(smiles, smiles_length, params["emb"],
                         params["p_sm"]).astype(jnp.float32)
    vf = jnp.concatenate([v0, v1, v2, v3, v4], axis=1)
    h = vf @ params["w1t"] + params["b1"]
    h = jnp.where(h > 0, h, 0.01 * h)
    ref = h @ params["w2t"] + params["b2"]
    assert jnp.allclose(out, ref, atol=1e-2, rtol=5e-2), (out, ref)

    print("KERNEL_OK")
</pallas_src>

<mosaic_0001>
module attributes {stable_mosaic.version = 11 : i64} {
  func.func @_protac_head_kernel(%arg0: i32, %arg1: memref<16x64xbf16, #tpu.memory_space<vmem>>, %arg2: memref<16x64xbf16, #tpu.memory_space<vmem>>, %arg3: memref<16x64xbf16, #tpu.memory_space<vmem>>, %arg4: memref<16x64xbf16, #tpu.memory_space<vmem>>, %arg5: memref<16x64xbf16, #tpu.memory_space<vmem>>, %arg6: memref<320x64xbf16, #tpu.memory_space<vmem>>, %arg7: memref<1x64xf32, #tpu.memory_space<vmem>>, %arg8: memref<64x8xf32, #tpu.memory_space<vmem>>, %arg9: memref<1x8xf32, #tpu.memory_space<vmem>>, %arg10: memref<16x8xf32, #tpu.memory_space<vmem>>) attributes {dimension_semantics = [#tpu.dimension_semantics<parallel>], iteration_bounds = array<i64: 1>, scalar_prefetch = 0 : i64, scratch_operands = 0 : i64, tpu.core_type = #tpu.core_type<tc>, window_params = [{transform_indices = @transform_0, window_bounds = array<i64: 16, 64>}, {transform_indices = @transform_1, window_bounds = array<i64: 16, 64>}, {transform_indices = @transform_2, window_bounds = array<i64: 16, 64>}, {transform_indices = @transform_3, window_bounds = array<i64: 16, 64>}, {transform_indices = @transform_4, window_bounds = array<i64: 16, 64>}, {pipeline_mode = #tpu.pipeline_mode<synchronous>, transform_indices = @transform_5, window_bounds = array<i64: 320, 64>}, {pipeline_mode = #tpu.pipeline_mode<synchronous>, transform_indices = @transform_6, window_bounds = array<i64: 1, 64>}, {pipeline_mode = #tpu.pipeline_mode<synchronous>, transform_indices = @transform_7, window_bounds = array<i64: 64, 8>}, {pipeline_mode = #tpu.pipeline_mode<synchronous>, transform_indices = @transform_8, window_bounds = array<i64: 1, 8>}, {transform_indices = @transform_9, window_bounds = array<i64: 16, 8>}]} {
    %c0 = arith.constant 0 : index
    %c0_0 = arith.constant 0 : index
    %0 = vector.load %arg1[%c0, %c0_0] : memref<16x64xbf16, #tpu.memory_space<vmem>>, vector<16x64xbf16>
    %c0_1 = arith.constant 0 : index
    %c0_2 = arith.constant 0 : index
    %1 = vector.load %arg6[%c0_1, %c0_2] : memref<320x64xbf16, #tpu.memory_space<vmem>>, vector<64x64xbf16>
    %cst = arith.constant dense<0.000000e+00> : vector<16x64xf32>
    %2 = tpu.matmul %0, %1, %cst {dimension_numbers = #tpu.dot_dimension_numbers<[1], [0], [0], [1], [0, 0, 1, 1], [], []>} : vector<16x64xbf16>, vector<64x64xbf16>, vector<16x64xf32> -> vector<16x64xf32>
    %c0_3 = arith.constant 0 : index
    %c0_4 = arith.constant 0 : index
    %3 = vector.load %arg2[%c0_3, %c0_4] : memref<16x64xbf16, #tpu.memory_space<vmem>>, vector<16x64xbf16>
    %c64 = arith.constant 64 : index
    %c0_5 = arith.constant 0 : index
    %4 = vector.load %arg6[%c64, %c0_5] : memref<320x64xbf16, #tpu.memory_space<vmem>>, vector<64x64xbf16>
    %cst_6 = arith.constant dense<0.000000e+00> : vector<16x64xf32>
    %5 = tpu.matmul %3, %4, %cst_6 {dimension_numbers = #tpu.dot_dimension_numbers<[1], [0], [0], [1], [0, 0, 1, 1], [], []>} : vector<16x64xbf16>, vector<64x64xbf16>, vector<16x64xf32> -> vector<16x64xf32>
    %6 = arith.addf %2, %5 : vector<16x64xf32>
    %c0_7 = arith.constant 0 : index
    %c0_8 = arith.constant 0 : index
    %7 = vector.load %arg3[%c0_7, %c0_8] : memref<16x64xbf16, #tpu.memory_space<vmem>>, vector<16x64xbf16>
    %c128 = arith.constant 128 : index
    %c0_9 = arith.constant 0 : index
    %8 = vector.load %arg6[%c128, %c0_9] : memref<320x64xbf16, #tpu.memory_space<vmem>>, vector<64x64xbf16>
    %cst_10 = arith.constant dense<0.000000e+00> : vector<16x64xf32>
    %9 = tpu.matmul %7, %8, %cst_10 {dimension_numbers = #tpu.dot_dimension_numbers<[1], [0], [0], [1], [0, 0, 1, 1], [], []>} : vector<16x64xbf16>, vector<64x64xbf16>, vector<16x64xf32> -> vector<16x64xf32>
    %10 = arith.addf %6, %9 : vector<16x64xf32>
    %c0_11 = arith.constant 0 : index
    %c0_12 = arith.constant 0 : index
    %11 = vector.load %arg4[%c0_11, %c0_12] : memref<16x64xbf16, #tpu.memory_space<vmem>>, vector<16x64xbf16>
    %c192 = arith.constant 192 : index
    %c0_13 = arith.constant 0 : index
    %12 = vector.load %arg6[%c192, %c0_13] : memref<320x64xbf16, #tpu.memory_space<vmem>>, vector<64x64xbf16>
    %cst_14 = arith.constant dense<0.000000e+00> : vector<16x64xf32>
    %13 = tpu.matmul %11, %12, %cst_14 {dimension_numbers = #tpu.dot_dimension_numbers<[1], [0], [0], [1], [0, 0, 1, 1], [], []>} : vector<16x64xbf16>, vector<64x64xbf16>, vector<16x64xf32> -> vector<16x64xf32>
    %14 = arith.addf %10, %13 : vector<16x64xf32>
    %c0_15 = arith.constant 0 : index
    %c0_16 = arith.constant 0 : index
    %15 = vector.load %arg5[%c0_15, %c0_16] : memref<16x64xbf16, #tpu.memory_space<vmem>>, vector<16x64xbf16>
    %c256 = arith.constant 256 : index
    %c0_17 = arith.constant 0 : index
    %16 = vector.load %arg6[%c256, %c0_17] : memref<320x64xbf16, #tpu.memory_space<vmem>>, vector<64x64xbf16>
    %cst_18 = arith.constant dense<0.000000e+00> : vector<16x64xf32>
    %17 = tpu.matmul %15, %16, %cst_18 {dimension_numbers = #tpu.dot_dimension_numbers<[1], [0], [0], [1], [0, 0, 1, 1], [], []>} : vector<16x64xbf16>, vector<64x64xbf16>, vector<16x64xf32> -> vector<16x64xf32>
    %18 = arith.addf %14, %17 : vector<16x64xf32>
    %c0_19 = arith.constant 0 : index
    %c0_20 = arith.constant 0 : index
    %19 = vector.load %arg7[%c0_19, %c0_20] : memref<1x64xf32, #tpu.memory_space<vmem>>, vector<1x64xf32>
    %20 = vector.broadcast %19 : vector<1x64xf32> to vector<16x64xf32>
    %21 = arith.addf %18, %20 : vector<16x64xf32>
    %cst_21 = arith.constant 0.000000e+00 : f32
    %22 = vector.broadcast %cst_21 : f32 to vector<16x64xf32>
    %23 = arith.cmpf ogt, %21, %22 : vector<16x64xf32>
    %cst_22 = arith.constant 0.00999999977 : f32
    %24 = vector.broadcast %cst_22 : f32 to vector<16x64xf32>
    %25 = arith.mulf %24, %21 : vector<16x64xf32>
    %26 = arith.select %23, %21, %25 : vector<16x64xi1>, vector<16x64xf32>
    %c0_23 = arith.constant 0 : index
    %c0_24 = arith.constant 0 : index
    %27 = vector.load %arg8[%c0_23, %c0_24] : memref<64x8xf32, #tpu.memory_space<vmem>>, vector<64x8xf32>
    %cst_25 = arith.constant dense<0.000000e+00> : vector<16x8xf32>
    %28 = tpu.matmul %26, %27, %cst_25 {dimension_numbers = #tpu.dot_dimension_numbers<[1], [0], [0], [1], [0, 0, 1, 1], [], []>} : vector<16x64xf32>, vector<64x8xf32>, vector<16x8xf32> -> vector<16x8xf32>
    %c0_26 = arith.constant 0 : index
    %c0_27 = arith.constant 0 : index
    %29 = vector.load %arg9[%c0_26, %c0_27] : memref<1x8xf32, #tpu.memory_space<vmem>>, vector<1x8xf32>
    %30 = vector.broadcast %29 : vector<1x8xf32> to vector<16x8xf32>
    %31 = arith.addf %28, %30 : vector<16x8xf32>
    %c0_28 = arith.constant 0 : index
    %c0_29 = arith.constant 0 : index
    %32 = vector.load %arg10[%c0_28, %c0_29] : memref<16x8xf32, #tpu.memory_space<vmem>>, vector<16x8xf32>
    tpu.vector_store %arg10[%c0_28, %c0_29], %31 {strides = array<i32>} : memref<16x8xf32, #tpu.memory_space<vmem>>, vector<16x8xf32>,
    return
  }
  func.func @transform_0(%arg0: i32) -> (i32, i32) {
    %c0_i32 = arith.constant 0 : i32
    %c0_i32_0 = arith.constant 0 : i32
    return %arg0, %c0_i32 : i32, i32
  }
  func.func @transform_1(%arg0: i32) -> (i32, i32) {
    %c0_i32 = arith.constant 0 : i32
    %c0_i32_0 = arith.constant 0 : i32
    return %arg0, %c0_i32 : i32, i32
  }
  func.func @transform_2(%arg0: i32) -> (i32, i32) {
    %c0_i32 = arith.constant 0 : i32
    %c0_i32_0 = arith.constant 0 : i32
    return %arg0, %c0_i32 : i32, i32
  }
  func.func @transform_3(%arg0: i32) -> (i32, i32) {
    %c0_i32 = arith.constant 0 : i32
    %c0_i32_0 = arith.constant 0 : i32
    return %arg0, %c0_i32 : i32, i32
  }
  func.func @transform_4(%arg0: i32) -> (i32, i32) {
    %c0_i32 = arith.constant 0 : i32
    %c0_i32_0 = arith.constant 0 : i32
    return %arg0, %c0_i32 : i32, i32
  }
  func.func @transform_5(%arg0: i32) -> (i32, i32) {
    %c0_i32 = arith.constant 0 : i32
    %c0_i32_0 = arith.constant 0 : i32
    %c0_i32_1 = arith.constant 0 : i32
    return %c0_i32, %c0_i32_0 : i32, i32
  }
  func.func @transform_6(%arg0: i32) -> (i32, i32) {
    %c0_i32 = arith.constant 0 : i32
    %c0_i32_0 = arith.constant 0 : i32
    %c0_i32_1 = arith.constant 0 : i32
    return %c0_i32, %c0_i32_0 : i32, i32
  }
  func.func @transform_7(%arg0: i32) -> (i32, i32) {
    %c0_i32 = arith.constant 0 : i32
    %c0_i32_0 = arith.constant 0 : i32
    %c0_i32_1 = arith.constant 0 : i32
    return %c0_i32, %c0_i32_0 : i32, i32
  }
  func.func @transform_8(%arg0: i32) -> (i32, i32) {
    %c0_i32 = arith.constant 0 : i32
    %c0_i32_0 = arith.constant 0 : i32
    %c0_i32_1 = arith.constant 0 : i32
    return %c0_i32, %c0_i32_0 : i32, i32
  }
  func.func @transform_9(%arg0: i32) -> (i32, i32) {
    %c0_i32 = arith.constant 0 : i32
    %c0_i32_0 = arith.constant 0 : i32
    return %arg0, %c0_i32 : i32, i32
  }
}

</mosaic_0001>

<bundles_post_ra>
// kernel: protac_head.1
= control target key start
LH: loop header
LB: loop body
LE: loop exit
PB: predicated region body
PF: predicated region fallthrough
CT: control target
= control target key end

     0   :  { %v764_v0 = vmov 0.0   ;;  %vm765_vm0 = vmmov 0   ;;  %vm82_vm1 = vcmask 523264   ;;  %vm566_vm4 = vcmask 64512   ;;  %s964_s5 = inlined_call_operand.vmem [shape: bf16[320,64], index: 5, kind: input, shape index: {}]   ;;  %s965_s1 = inlined_call_operand.vmem [shape: bf16[16,64], index: 1, kind: input, shape index: {}]   ;;  %s966_s0 = inlined_call_operand.vmem [shape: bf16[16,64], index: 0, kind: input, shape index: {}]   ;;  %s967_s2 = inlined_call_operand.vmem [shape: bf16[16,64], index: 2, kind: input, shape index: {}]   ;;  %s968_s3 = inlined_call_operand.vmem [shape: bf16[16,64], index: 3, kind: input, shape index: {}]   ;;  %s969_s4 = inlined_call_operand.vmem [shape: bf16[16,64], index: 4, kind: input, shape index: {}]   ;;  %s970_s7 = inlined_call_operand.vmem [shape: f32[64,8], index: 7, kind: input, shape index: {}]   ;;  %s971_s6 = inlined_call_operand.vmem [shape: f32[1,64], index: 6, kind: input, shape index: {}]   ;;  %s972_s8 = inlined_call_operand.vmem [shape: f32[1,8], index: 8, kind: input, shape index: {}]   ;;  %s973_s9 = inlined_call_operand.vmem [shape: f32[16,8], index: 9, kind: output, shape index: {}]  }
   0x1   :  { %642 = vmatprep.subr.bf16.mxu0 %v764_v0  ;;  %654 = vmatprep.subr.bf16.mxu1 %v764_v0  ;;  %v739_v1 = vld [vmem:[%s964_s5 + $0x20] sm:$0xff]   ;;  %v741_v3 = vld [vmem:[%s964_s5 + $0x28] sm:$0xff]   ;;  %v743_v5 = vld [vmem:[%s964_s5 + $0x30] sm:$0xff]  }
   0x2   :  { %v740_v2 = vld [vmem:[%s964_s5] sm:$0xff]   ;;  %650 = vmatprep.mubr.msk.bf16.mxu0 %vm765_vm0, %v764_v0  ;;  %662 = vmatprep.mubr.msk.bf16.mxu1 %vm765_vm0, %v764_v0  ;;  %v742_v4 = vld [vmem:[%s964_s5 + $0x8] sm:$0xff]   ;;  %v744_v6 = vld [vmem:[%s964_s5 + $0x10] sm:$0xff]  }
   0x3   :  { %643 = vmatpush3.bf16.msra.mxu0 %v739_v1  ;;  %655 = vmatpush3.bf16.msra.mxu1 %v740_v2  ;;  %v745_v7 = vld [vmem:[%s964_s5 + $0x38] sm:$0xff]   ;;  %v747_v9 = vld [vmem:[%s965_s1] sm:$0xff]   ;;  %v751_v13 = vld [vmem:[%s964_s5 + $0x48] sm:$0xff]  }
   0x4   :  { %644 = vmatprep.subr.bf16.mxu0 %v764_v0  ;;  %656 = vmatprep.subr.bf16.mxu1 %v764_v0  ;;  %v746_v8 = vld [vmem:[%s964_s5 + $0x18] sm:$0xff]   ;;  %v748_v10 = vld [vmem:[%s966_s0] sm:$0xff]   ;;  %v752_v14 = vld [vmem:[%s964_s5 + $0x68] sm:$0xff]  }
   0x5   :  { %v749_v11 = vld [vmem:[%s964_s5 + $0x40] sm:$0xff]   ;;  %v753_v15 = vld [vmem:[%s964_s5 + $0x50] sm:$0xff]   ;;  %v755_v17 = vld [vmem:[%s964_s5 + $0x58] sm:$0xff]  }
   0x6   :  { %v750_v12 = vld [vmem:[%s964_s5 + $0x60] sm:$0xff]   ;;  %v754_v16 = vld [vmem:[%s964_s5 + $0x70] sm:$0xff]   ;;  %v756_v18 = vld [vmem:[%s964_s5 + $0x78] sm:$0xff]  }
   0x7   :  { %645 = vmatpush3.bf16.msra.mxu0 %v741_v3  ;;  %657 = vmatpush3.bf16.msra.mxu1 %v742_v4  ;;  %v757_v19 = vld [vmem:[%s967_s2] sm:$0xff]   ;;  %v760_v22 = vld [vmem:[%s964_s5 + $0x88] sm:$0xff]   ;;  %v761_v23 = vld [vmem:[%s964_s5 + $0x90] sm:$0xff]  }
   0x8   :  { %646 = vmatprep.subr.bf16.mxu0 %v764_v0  ;;  %658 = vmatprep.subr.bf16.mxu1 %v764_v0  ;;  %v758_v20 = vld [vmem:[%s964_s5 + $0x80] sm:$0xff]   ;;  %v762_v24 = vld [vmem:[%s964_s5 + $0x98] sm:$0xff]   ;;  %v471_v27 = vld [vmem:[%s970_s7 + $0x8] sm:$0xff] }
   0x9   :  { %v759_v21 = vld [vmem:[%s968_s3] sm:$0xff]   ;;  %v472_v28 = vld [vmem:[%s970_s7 + $0x10] sm:$0xff]  ;;  %v473_v30 = vld [vmem:[%s970_s7 + $0x18] sm:$0xff] }
   0xa   :  { %v763_v25 = vld [vmem:[%s969_s4] sm:$0xff]   ;;  %v725_v31 = vpack.c.bf16 %v473_v30, %v472_v28  ;;  %v475_v33 = vld [vmem:[%s970_s7 + $0x28] sm:$0xff]  ;;  %v476_v35 = vld [vmem:[%s970_s7 + $0x30] sm:$0xff] }
   0xb   :  { %647 = vmatpush3.bf16.msra.mxu0 %v743_v5  ;;  %659 = vmatpush3.bf16.msra.mxu1 %v744_v6  ;;  %v470_v26 = vld [vmem:[%s970_s7] sm:$0xff]  ;;  %v477_v36 = vld [vmem:[%s970_s7 + $0x38] sm:$0xff] }
   0xc   :  { %648 = vmatprep.subr.bf16.mxu0 %v764_v0  ;;  %660 = vmatprep.subr.bf16.mxu1 %v764_v0  ;;  %v721_v29 = vpack.c.bf16 %v471_v27, %v470_v26  ;;  %v474_v32 = vld [vmem:[%s970_s7 + $0x20] sm:$0xff]  ;;  %v733_v37 = vpack.c.bf16 %v477_v36, %v476_v35 }
   0xd   :  { %v729_v34 = vpack.c.bf16 %v475_v33, %v474_v32  ;;  %v603_v61 = vld [vmem:[%s971_s6] ss:$0 sm:$0xff] }
   0xf   :  { %649 = vmatpush3.bf16.msra.mxu0 %v745_v7  ;;  %661 = vmatpush3.bf16.msra.mxu1 %v746_v8 }
  0x10   :  { %666 = vmatprep.subr.bf16.mxu0 %v764_v0  ;;  %678 = vmatprep.subr.bf16.mxu1 %v764_v0 }
  0x12   :  { %651 = vmatmul.mubr.msk.bf16.vlgmr.msra.gmra.mrb[0].mxu0 %vm82_vm1, %v747_v9  ;;  %663 = vmatmul.mubr.msk.bf16.vlgmr.msra.gmra.mrb[0].mxu1 %vm82_vm1, %v748_v10  ;;  %v604_v9 = vld [vmem:[%s972_s8] ss:$0 sm:$0xff] }
  0x13   :  { %667 = vmatpush3.bf16.msra.mxu0 %v749_v11  ;;  %679 = vmatpush3.bf16.msra.mxu1 %v750_v12 }
  0x14   :  { %668 = vmatprep.subr.bf16.mxu0 %v764_v0  ;;  %680 = vmatprep.subr.bf16.mxu1 %v764_v0 }
  0x15   :  { %674 = vmatprep.mubr.msk.bf16.mxu0 %vm765_vm0, %v764_v0  ;;  %686 = vmatprep.mubr.msk.bf16.mxu1 %vm765_vm0, %v764_v0 }
  0x17   :  { %669 = vmatpush3.bf16.msra.mxu0 %v751_v13  ;;  %681 = vmatpush3.bf16.msra.mxu1 %v752_v14 }
  0x18   :  { %670 = vmatprep.subr.bf16.mxu0 %v764_v0  ;;  %682 = vmatprep.subr.bf16.mxu1 %v764_v0 }
  0x1b   :  { %671 = vmatpush3.bf16.msra.mxu0 %v753_v15  ;;  %683 = vmatpush3.bf16.msra.mxu1 %v754_v16 }
  0x1c   :  { %672 = vmatprep.subr.bf16.mxu0 %v764_v0  ;;  %684 = vmatprep.subr.bf16.mxu1 %v764_v0 }
  0x1f   :  { %673 = vmatpush3.bf16.msra.mxu0 %v755_v17  ;;  %685 = vmatpush3.bf16.msra.mxu1 %v756_v18 }
  0x20   :  { %690 = vmatprep.subr.bf16.mxu0 %v764_v0  ;;  %722 = vmatprep.subr.bf16.mxu1 %v721_v29 }
  0x22   :  { %675 = vmatmul.mubr.msk.bf16.vlgmr.msra.gmra.mrb[4].mxu0 %vm82_vm1, %v757_v19  ;;  %687 = vmatmul.mubr.msk.bf16.vlgmr.msra.gmra.mrb[4].mxu1 %vm82_vm1, %v759_v21 }
  0x23   :  { %691 = vmatpush3.bf16.msra.mxu0 %v758_v20  ;;  %698 = vmatprep.mubr.msk.bf16.mxu0 %vm765_vm0, %v764_v0 }
  0x24   :  { %692 = vmatprep.subr.bf16.mxu0 %v764_v0  ;;  %724 = vmatpush3.bf16.msra.mxu1 %v721_v29 }
  0x25   :  { %726 = vmatprep.subr.bf16.mxu1 %v725_v31 }
  0x27   :  { %693 = vmatpush3.bf16.msra.mxu0 %v760_v22 }
  0x28   :  { %694 = vmatprep.subr.bf16.mxu0 %v764_v0  ;;  %728 = vmatpush3.bf16.msra.mxu1 %v725_v31 }
  0x29   :  { %730 = vmatprep.subr.bf16.mxu1 %v729_v34 }
  0x2b   :  { %695 = vmatpush3.bf16.msra.mxu0 %v761_v23 }
  0x2c   :  { %696 = vmatprep.subr.bf16.mxu0 %v764_v0  ;;  %732 = vmatpush3.bf16.msra.mxu1 %v729_v34 }
  0x2d   :  { %734 = vmatprep.subr.bf16.mxu1 %v733_v37 }
  0x2f   :  { %697 = vmatpush3.bf16.msra.mxu0 %v762_v24 }
  0x30   :  { %736 = vmatpush3.bf16.msra.mxu1 %v733_v37 }
  0x32   :  { %699 = vmatmul.mubr.msk.bf16.vlgmr.msra.gmra.mrb[8].mxu0 %vm82_vm1, %v763_v25 }
  0xe5   :  { %v120_v38 = vpop.f32.mrb[0].mxu0  ;;  %v193_v39 = vpop.f32.mrb[0].mxu1 }
  0xe6   :  { %v652_v40 = vpop.f32.mrb[1].mxu0  ;;  %v194_v41 = vadd.f32 %v193_v39, %v120_v38  ;;  %v664_v42 = vpop.f32.mrb[1].mxu1 }
  0xe7   :  { %v123_v43 = vpop.f32.mrb[2].mxu0  ;;  %v196_v44 = vpop.f32.mrb[2].mxu1 }
  0xe8   :  { %v653_v45 = vpop.f32.mrb[3].mxu0  ;;  %v197_v46 = vadd.f32 %v196_v44, %v123_v43  ;;  %v665_v47 = vpop.f32.mrb[3].mxu1 }
  0xf5   :  { %v276_v48 = vpop.f32.mrb[4].mxu0  ;;  %v361_v51 = vpop.f32.mrb[4].mxu1 }
  0xf6   :  { %v283_v49 = vadd.f32 %v276_v48, %v194_v41  ;;  %v676_v50 = vpop.f32.mrb[5].mxu0  ;;  %v688_v53 = vpop.f32.mrb[5].mxu1 }
  0xf7   :  { %v279_v52 = vpop.f32.mrb[6].mxu0  ;;  %v364_v57 = vpop.f32.mrb[6].mxu1 }
  0xf8   :  { %v284_v54 = vadd.f32 %v279_v52, %v197_v46  ;;  %v368_v55 = vadd.f32 %v361_v51, %v283_v49  ;;  %v677_v56 = vpop.f32.mrb[7].mxu0  ;;  %v689_v58 = vpop.f32.mrb[7].mxu1 }
  0xfa   :  { %v369_v59 = vadd.f32 %v364_v57, %v284_v54 }
 0x105   :  { %v446_v60 = vpop.f32.mrb[8].mxu0 }
 0x106   :  { %v453_v62 = vadd.f32 %v446_v60, %v368_v55  ;;  %v700_v63 = vpop.f32.mrb[9].mxu0 }
 0x107   :  { %v449_v0 = vpop.f32.mrb[10].mxu0 }
 0x108   :  { %v462_v1 = vadd.f32 %v603_v61, %v453_v62  ;;  %v454_v2 = vadd.f32 %v449_v0, %v369_v59  ;;  %v701_v3 = vpop.f32.mrb[11].mxu0 }
 0x10a   :  { %v466_v4 = vmul.f32 0.01, %v462_v1  ;;  %v463_v5 = vadd.f32 %v603_v61, %v454_v2  ;;  %vm464_vm2 = vcmp.gt.f32.partialorder %v462_v1, 0.0 }
 0x10c   :  { %vm465_vm3 = vcmp.gt.f32.partialorder %v463_v5, 0.0  ;;  %v467_v6 = vmul.f32 0.01, %v463_v5  ;;  %v468_v7 = vsel %vm464_vm2, %v462_v1, %v466_v4 }
 0x10d   :  { %718 = vmatprep.mubr.msk.f32.mxu1 %vm82_vm1, %v468_v7 }
 0x10e   :  { %v469_v8 = vsel %vm465_vm3, %v463_v5, %v467_v6 }
 0x10f   :  { %719 = vmatmul.mubr.msk.f32.vlgmr.msra.gmra.mrb[8].mxu1 %vm82_vm1, %v469_v8 }
 0x1e2   :  { %v720_v10 = vpop.f32.mrb[8].mxu1 }
 0x1e3   :  { %v563_v11 = vadd.f32 %v720_v10, %v604_v9  ;;  %v557_v12 = vpop.f32.mrb[9].mxu1 }
 0x1e4   :  { %v558_v13 = vadd.f32 %v604_v9, %v557_v12 }
 0x1e5   :  { %568 = vst.msk [vmem:[%s973_s9 + $0x8] sm:$0xff] %vm566_vm4, %v563_v11 }
 0x1e6   :  { %567 = vst.msk [vmem:[%s973_s9] sm:$0xff] %vm566_vm4, %v558_v13 }

</bundles_post_ra>
